<compile_context>
chip_gen: v7x
topology: tpu7x:2x2x1
jax: 0.10.0
libtpu: 0.0.40
codegen_flags: <defaults>
</compile_context>

<pallas_src>
import functools

import jax
import jax.numpy as jnp
from jax.experimental import pallas as pl
from jax.experimental.pallas import tpu as pltpu

BN_EPS = 1e-5


# ---------------------------------------------------------------------------
# Fused Pallas kernel: conv-as-matmul + bias + BN(batch stats) + ReLU + head
# ---------------------------------------------------------------------------
def _fused_kernel(pT_ref, w_ref, b_ref, g_ref, beta_ref, hw_ref, hb_ref, o_ref,
                  *, n, p):
    """Fused GridConvNet forward.

    pT_ref:   (18, R)          im2col patches, rows ordered (cin, dy, dx),
                               columns ordered n*P + oh*OW + ow, R = N*P.
    w_ref:    (Cout, 18)       conv weight (OIHW flattened over I*KH*KW).
    b_ref:    (Cout, 1)        conv bias.
    g_ref:    (Cout, 1)        BN gamma.
    beta_ref: (Cout, 1)        BN beta.
    hw_ref:   (Cout, n_out, P) head weight (lane axis = P, lane-dense).
    hb_ref:   (1, n_out)       head bias.
    o_ref:    (N, n_out)       output logits.
    """
    r = n * p

    # Conv as a single MXU matmul, channel-major: (Cout, 18) @ (18, R).
    conv = jnp.dot(w_ref[...], pT_ref[...], preferred_element_type=jnp.float32)
    conv = conv + b_ref[...]                                     # (Cout, R)

    # BatchNorm2d (training forward: biased batch variance), single pass:
    # per-channel mean / E[x^2] via lane-axis reduces, folded into one FMA.
    inv_r = 1.0 / float(r)
    mean = jnp.sum(conv, axis=1, keepdims=True) * inv_r          # (Cout, 1)
    ex2 = jnp.sum(conv * conv, axis=1, keepdims=True) * inv_r    # (Cout, 1)
    var = jnp.maximum(ex2 - mean * mean, 0.0)
    scale = g_ref[...] * jax.lax.rsqrt(var + BN_EPS)             # (Cout, 1)
    shift = beta_ref[...] - mean * scale
    feat = jnp.maximum(conv * scale + shift, 0.0)                # (Cout, R), ReLU'd

    # Linear head, fused. Per-sample slab feat[:, i*P:(i+1)*P] is exactly
    # PyTorch's (c, oh, ow) flatten order, so no weight permutation is needed.
    slabs = jnp.stack([feat[:, i * p:(i + 1) * p] for i in range(n)], axis=1)
    # slabs: (Cout, N, P); hw: (Cout, n_out, P) -> batch Cout, contract P.
    head = jnp.einsum('cnp,cjp->cnj', slabs, hw_ref[...],
                      preferred_element_type=jnp.float32)        # (Cout, N, n_out)
    o_ref[...] = jnp.sum(head, axis=0) + hb_ref[...]


# ---------------------------------------------------------------------------
# One-time parameter prep (hoisted out of the per-call forward)
# ---------------------------------------------------------------------------
def prepare_params(params):
    conv_w = params["conv_w"]                     # (Cout, Cin, 3, 3) torch OIHW
    cout, cin, kh, kw = conv_w.shape
    head_w = params["head_w"]                     # (n_out, Cout*OH*OW) torch
    n_out, f = head_w.shape
    p = f // cout                                 # OH*OW
    return {
        "w_mat": conv_w.reshape(cout, cin * kh * kw),                    # (Cout, 18)
        "conv_b": params["conv_b"].reshape(cout, 1),
        "bn_gamma": params["bn_gamma"].reshape(cout, 1),
        "bn_beta": params["bn_beta"].reshape(cout, 1),
        # (n_out, Cout, P) -> (Cout, n_out, P): lane axis = P (lane-dense).
        "head_w": jnp.transpose(head_w.reshape(n_out, cout, p), (1, 0, 2)),
        "head_b": params["head_b"].reshape(1, n_out),
    }


# ---------------------------------------------------------------------------
# Forward wrapper (input glue: channel-major im2col -> fused pallas_call)
# ---------------------------------------------------------------------------
@jax.jit
def grid_conv_net_forward(x_nchw, prepped):
    """x_nchw: (N, Cin, H, W) float32 (PyTorch layout)."""
    n, cin, h, w = x_nchw.shape
    cout, kkc = prepped["w_mat"].shape
    k = int(round((kkc // cin) ** 0.5))           # 3
    n_out = prepped["head_b"].shape[-1]
    oh, ow = h - k + 1, w - k + 1
    p = oh * ow
    r = n * p

    # Glue: channel-major im2col, directly in transposed (18, R) layout.
    x_c = jnp.transpose(x_nchw, (1, 0, 2, 3))     # (Cin, N, H, W)
    rows = []
    for ci in range(cin):
        for dy in range(k):
            for dx in range(k):
                rows.append(x_c[ci, :, dy:dy + oh, dx:dx + ow].reshape(1, r))
    patches_t = jnp.concatenate(rows, axis=0)     # (Cin*k*k, R) = (18, R)

    kernel = functools.partial(_fused_kernel, n=n, p=p)
    vmem = pl.BlockSpec(memory_space=pltpu.MemorySpace.VMEM)
    out = pl.pallas_call(
        kernel,
        out_shape=jax.ShapeDtypeStruct((n, n_out), jnp.float32),
        in_specs=[vmem] * 7,
        out_specs=vmem,
        compiler_params=pltpu.CompilerParams(
            vmem_limit_bytes=16 * 1024 * 1024),
    )(
        patches_t,
        prepped["w_mat"],
        prepped["conv_b"],
        prepped["bn_gamma"],
        prepped["bn_beta"],
        prepped["head_w"],
        prepped["head_b"],
    )
    return out


# ---------------------------------------------------------------------------
# Pure-JAX reference (PyTorch NCHW semantics) for verification
# ---------------------------------------------------------------------------
def reference_forward(x_nchw, params):
    conv = jax.lax.conv_general_dilated(
        x_nchw, params["conv_w"], window_strides=(1, 1), padding="VALID",
        dimension_numbers=("NCHW", "OIHW", "NCHW"),
    ) + params["conv_b"][None, :, None, None]
    mean = jnp.mean(conv, axis=(0, 2, 3), keepdims=True)
    var = jnp.mean((conv - mean) ** 2, axis=(0, 2, 3), keepdims=True)
    y = (conv - mean) * jax.lax.rsqrt(var + BN_EPS)
    y = y * params["bn_gamma"][None, :, None, None] + params["bn_beta"][None, :, None, None]
    y = jnp.maximum(y, 0.0)
    flat = y.reshape(y.shape[0], -1)              # (N, C*OH*OW) C-major flatten
    return flat @ params["head_w"].T + params["head_b"]


# ---------------------------------------------------------------------------
def make_params(key, h, w, n_out):
    oh, ow = h - 2, w - 2
    k1, k2, k3, k4, k5, k6 = jax.random.split(key, 6)
    return {
        "conv_w": 0.1 * jax.random.normal(k1, (8, 2, 3, 3), jnp.float32),
        "conv_b": 0.1 * jax.random.normal(k2, (8,), jnp.float32),
        "bn_gamma": 1.0 + 0.1 * jax.random.normal(k3, (8,), jnp.float32),
        "bn_beta": 0.1 * jax.random.normal(k4, (8,), jnp.float32),
        "head_w": 0.05 * jax.random.normal(k5, (n_out, 8 * oh * ow), jnp.float32),
        "head_b": 0.05 * jax.random.normal(k6, (n_out,), jnp.float32),
    }


if __name__ == "__main__":
    h, w, n_out = 16, 16, 8
    batch = 2

    key = jax.random.PRNGKey(0)
    kx, kp = jax.random.split(key)
    x = jax.random.normal(kx, (batch, 2, h, w), jnp.float32)   # NCHW, like torch
    params = make_params(kp, h, w, n_out)
    prepped = prepare_params(params)                           # one-time prep

    out = grid_conv_net_forward(x, prepped)
    out = jax.block_until_ready(out)

    ref = jax.block_until_ready(reference_forward(x, params))
    assert out.shape == (batch, n_out)
    max_err = jnp.max(jnp.abs(out - ref))
    assert jnp.allclose(out, ref, rtol=1e-4, atol=1e-4), (
        f"mismatch: max abs err {max_err}"
    )

    print("KERNEL_OK")
</pallas_src>

<mosaic_0001>
module attributes {stable_mosaic.version = 11 : i64} {
  func.func @_fused_kernel(%arg0: memref<18x392xf32, #tpu.memory_space<vmem>>, %arg1: memref<8x18xf32, #tpu.memory_space<vmem>>, %arg2: memref<8x1xf32, #tpu.memory_space<vmem>>, %arg3: memref<8x1xf32, #tpu.memory_space<vmem>>, %arg4: memref<8x1xf32, #tpu.memory_space<vmem>>, %arg5: memref<8x8x196xf32, #tpu.memory_space<vmem>>, %arg6: memref<1x8xf32, #tpu.memory_space<vmem>>, %arg7: memref<2x8xf32, #tpu.memory_space<vmem>>) attributes {dimension_semantics = [], scalar_prefetch = 0 : i64, scratch_operands = 0 : i64, tpu.core_type = #tpu.core_type<tc>} {
    %c0 = arith.constant 0 : index
    %c0_0 = arith.constant 0 : index
    %0 = vector.load %arg1[%c0, %c0_0] : memref<8x18xf32, #tpu.memory_space<vmem>>, vector<8x18xf32>
    %c0_1 = arith.constant 0 : index
    %c0_2 = arith.constant 0 : index
    %1 = vector.load %arg0[%c0_1, %c0_2] : memref<18x392xf32, #tpu.memory_space<vmem>>, vector<18x392xf32>
    %cst = arith.constant dense<0.000000e+00> : vector<8x392xf32>
    %2 = tpu.matmul %0, %1, %cst {dimension_numbers = #tpu.dot_dimension_numbers<[1], [0], [0], [1], [0, 0, 1, 1], [], []>} : vector<8x18xf32>, vector<18x392xf32>, vector<8x392xf32> -> vector<8x392xf32>
    %c0_3 = arith.constant 0 : index
    %c0_4 = arith.constant 0 : index
    %3 = vector.load %arg2[%c0_3, %c0_4] : memref<8x1xf32, #tpu.memory_space<vmem>>, vector<8x1xf32>
    %4 = vector.broadcast %3 : vector<8x1xf32> to vector<8x392xf32>
    %5 = arith.addf %2, %4 : vector<8x392xf32>
    %cst_5 = arith.constant dense<0.000000e+00> : vector<8xf32>
    %6 = vector.multi_reduction <add>, %5, %cst_5 [1] : vector<8x392xf32> to vector<8xf32>
    %7 = vector.shape_cast %6 : vector<8xf32> to vector<8x1xf32>
    %cst_6 = arith.constant 0.00255102036 : f32
    %8 = vector.broadcast %cst_6 : f32 to vector<8x1xf32>
    %9 = arith.mulf %7, %8 : vector<8x1xf32>
    %10 = arith.mulf %5, %5 : vector<8x392xf32>
    %cst_7 = arith.constant dense<0.000000e+00> : vector<8xf32>
    %11 = vector.multi_reduction <add>, %10, %cst_7 [1] : vector<8x392xf32> to vector<8xf32>
    %12 = vector.shape_cast %11 : vector<8xf32> to vector<8x1xf32>
    %cst_8 = arith.constant 0.00255102036 : f32
    %13 = vector.broadcast %cst_8 : f32 to vector<8x1xf32>
    %14 = arith.mulf %12, %13 : vector<8x1xf32>
    %15 = arith.mulf %9, %9 : vector<8x1xf32>
    %16 = arith.subf %14, %15 : vector<8x1xf32>
    %cst_9 = arith.constant 0.000000e+00 : f32
    %17 = vector.broadcast %cst_9 : f32 to vector<8x1xf32>
    %18 = arith.maximumf %16, %17 : vector<8x1xf32>
    %c0_10 = arith.constant 0 : index
    %c0_11 = arith.constant 0 : index
    %19 = vector.load %arg3[%c0_10, %c0_11] : memref<8x1xf32, #tpu.memory_space<vmem>>, vector<8x1xf32>
    %cst_12 = arith.constant 9.99999974E-6 : f32
    %20 = vector.broadcast %cst_12 : f32 to vector<8x1xf32>
    %21 = arith.addf %18, %20 : vector<8x1xf32>
    %22 = math.rsqrt %21 : vector<8x1xf32>
    %23 = arith.mulf %19, %22 : vector<8x1xf32>
    %c0_13 = arith.constant 0 : index
    %c0_14 = arith.constant 0 : index
    %24 = vector.load %arg4[%c0_13, %c0_14] : memref<8x1xf32, #tpu.memory_space<vmem>>, vector<8x1xf32>
    %25 = arith.mulf %9, %23 : vector<8x1xf32>
    %26 = arith.subf %24, %25 : vector<8x1xf32>
    %27 = vector.broadcast %23 : vector<8x1xf32> to vector<8x392xf32>
    %28 = arith.mulf %5, %27 : vector<8x392xf32>
    %29 = vector.broadcast %26 : vector<8x1xf32> to vector<8x392xf32>
    %30 = arith.addf %28, %29 : vector<8x392xf32>
    %cst_15 = arith.constant 0.000000e+00 : f32
    %31 = vector.broadcast %cst_15 : f32 to vector<8x392xf32>
    %32 = arith.maximumf %30, %31 : vector<8x392xf32>
    %33 = vector.extract_strided_slice %32 {offsets = [0, 0], sizes = [8, 196], strides = [1, 1]} : vector<8x392xf32> to vector<8x196xf32>
    %34 = vector.extract_strided_slice %32 {offsets = [0, 196], sizes = [8, 196], strides = [1, 1]} : vector<8x392xf32> to vector<8x196xf32>
    %35 = vector.shape_cast %33 : vector<8x196xf32> to vector<8x1x196xf32>
    %36 = vector.shape_cast %34 : vector<8x196xf32> to vector<8x1x196xf32>
    %37 = tpu.concatenate %35, %36 in 1 : vector<8x1x196xf32>, vector<8x1x196xf32> -> vector<8x2x196xf32>
    %c0_16 = arith.constant 0 : index
    %c0_17 = arith.constant 0 : index
    %c0_18 = arith.constant 0 : index
    %38 = vector.load %arg5[%c0_16, %c0_17, %c0_18] : memref<8x8x196xf32, #tpu.memory_space<vmem>>, vector<8x8x196xf32>
    "tpu.trace_start"() <{level = 10 : i32, message = "cnp,cjp->cnj"}> : () -> ()
    %cst_19 = arith.constant dense<0.000000e+00> : vector<8x2x8xf32>
    %39 = tpu.matmul %37, %38, %cst_19 {dimension_numbers = #tpu.dot_dimension_numbers<[2], [2], [1], [1], [0, 0, 0, 1, 1, 1], [0], [0]>} : vector<8x2x196xf32>, vector<8x8x196xf32>, vector<8x2x8xf32> -> vector<8x2x8xf32>
    "tpu.trace_stop"() : () -> ()
    %cst_20 = arith.constant dense<0.000000e+00> : vector<2x8xf32>
    %40 = vector.multi_reduction <add>, %39, %cst_20 [0] : vector<8x2x8xf32> to vector<2x8xf32>
    %c0_21 = arith.constant 0 : index
    %c0_22 = arith.constant 0 : index
    %41 = vector.load %arg6[%c0_21, %c0_22] : memref<1x8xf32, #tpu.memory_space<vmem>>, vector<1x8xf32>
    %42 = vector.broadcast %41 : vector<1x8xf32> to vector<2x8xf32>
    %43 = arith.addf %40, %42 : vector<2x8xf32>
    %c0_23 = arith.constant 0 : index
    %c0_24 = arith.constant 0 : index
    %44 = vector.load %arg7[%c0_23, %c0_24] : memref<2x8xf32, #tpu.memory_space<vmem>>, vector<2x8xf32>
    tpu.vector_store %arg7[%c0_23, %c0_24], %43 {strides = array<i32>} : memref<2x8xf32, #tpu.memory_space<vmem>>, vector<2x8xf32>,
    return
  }
}

</mosaic_0001>

<bundles_post_ra>
// kernel: squeeze.18
= control target key start
LH: loop header
LB: loop body
LE: loop exit
PB: predicated region body
PF: predicated region fallthrough
CT: control target
= control target key end

     0   :  { %vm9_vm0 = vcmask 15360   ;;  %vm36_vm1 = vcmask 48128   ;;  %s291_s14 = smov 126   ;;  %vm22_vm2 = vcmask 31744   ;;  %s292_s19 = smov 122   ;;  %vm3_vm3 = vcmask 113664   ;;  %s433_s0 = inlined_call_operand.vmem [shape: f32[1,2,14,14], index: 0, kind: input, shape index: {}]   ;;  %s434_s1 = inlined_call_operand.vmem [shape: f32[1,392], index: 1, kind: output, shape index: {}]  }
   0x1   :  { %v231_v0 = vld [vmem:[%s433_s0 + $0x9] sm:$0x1]   ;;  %v235_v3 = vld [vmem:[%s433_s0 + $0x1d] sm:$0x1]   ;;  %v233_v6 = vld [vmem:[%s433_s0 + $0x14] sm:$0x1]  }
   0x2   :  { %v232_v1 = vld [vmem:[%s433_s0 + $0x9] sm:$0x1]   ;;  %v236_v4 = vld [vmem:[%s433_s0 + $0x1d] sm:$0x1]   ;;  %v234_v7 = vld [vmem:[%s433_s0 + $0x14] sm:$0x1]  }
   0x3   :  { %v10_v2 = vsel %vm9_vm0, %v232_v1, %v231_v0  ;;  %v37_v5 = vsel %vm36_vm1, %v236_v4, %v235_v3  ;;  %v23_v8 = vsel %vm22_vm2, %v234_v7, %v233_v6  ;;  %v237_v9 = vld [vmem:[%s433_s0 + $0x8] sm:$0x1]   ;;  %s293_s22 = smov 124   ;;  %s294_s23 = smov 112   ;;  %v238_v10 = vld [vmem:[%s433_s0 + $0x13] sm:$0x1]  }
   0x4   :  { %11 = vrot.lane.b32.xlu0 %v10_v2, %s291_s14  ;;  %38 = vrot.lane.b32.xlu1 %v37_v5, %s292_s19  ;;  %v239_v11 = vld [vmem:[%s433_s0 + $0x1c] sm:$0x1]   ;;  %s295_s28 = smov 110   ;;  %s296_s29 = smov 108   ;;  %v240_v12 = vld [vmem:[%s433_s0 + $0x7] sm:$0x1]  }
   0x5   :  { %v241_v13 = vld [vmem:[%s433_s0 + $0x12] sm:$0x1]   ;;  %s297_s5 = smov 98   ;;  %s298_s6 = smov 96   ;;  %v242_v14 = vld [vmem:[%s433_s0 + $0x1b] sm:$0x1]  }
   0x6   :  { %v2_v15 = vld [vmem:[%s433_s0] sm:$0x1]   ;;  %v243_v16 = vld [vmem:[%s433_s0 + $0x6] sm:$0x1]   ;;  %s299_s13 = smov 94   ;;  %s300_s14 = smov 84  }
   0x7   :  { %4 = vst.msk [vmem:[#allocation0] sm:$0x1] %vm3_vm3, %v2_v15   ;;  %v244_v17 = vld [vmem:[%s433_s0 + $0x11] sm:$0x1]   ;;  %v245_v18 = vld [vmem:[%s433_s0 + $0x1a] sm:$0x1]  }
   0x8   :  { %24 = vrot.lane.b32.xlu0 %v23_v8, %s293_s22  ;;  %48 = vrot.lane.b32.xlu1 %v237_v9, %s294_s23  ;;  %s301_s19 = smov 82   ;;  %s302_s20 = smov 80   ;;  %v246_v19 = vld [vmem:[%s433_s0 + $0x5] sm:$0x1]   ;;  %v247_v20 = vld [vmem:[%s433_s0 + $0x10] sm:$0x1]  }
   0x9   :  { %s303_s25 = smov 70   ;;  %s304_s26 = smov 68   ;;  %v248_v21 = vld [vmem:[%s433_s0 + $0x19] sm:$0x1]   ;;  %v249_v22 = vld [vmem:[%s433_s0 + $0x4] sm:$0x1]  }
   0xa   :  { %s305_s2 = smov 66   ;;  %s306_s3 = smov 56   ;;  %v250_v23 = vld [vmem:[%s433_s0 + $0xd] sm:$0x1]   ;;  %v251_v24 = vld [vmem:[%s433_s0 + $0x18] sm:$0x1]  }
   0xb   :  { %s307_s8 = smov 54   ;;  %s308_s9 = smov 52   ;;  %v252_v25 = vld [vmem:[%s433_s0 + $0x3] sm:$0x1]   ;;  %v253_v26 = vld [vmem:[%s433_s0 + $0xc] sm:$0x1]  }
   0xc   :  { %54 = vrot.lane.b32.xlu0 %v238_v10, %s295_s28  ;;  %61 = vrot.lane.b32.xlu1 %v239_v11, %s296_s29  ;;  %s310_s15 = smov 40   ;;  %v254_v27 = vld [vmem:[%s433_s0 + $0x17] sm:$0x1]   ;;  %v255_v28 = vld [vmem:[%s433_s0 + $0x2] sm:$0x1]   ;;  %s312_s21 = smov 28  }
   0xd   :  { %v256_v29 = vld [vmem:[%s433_s0 + $0xb] sm:$0x1]   ;;  %v257_v30 = vld [vmem:[%s433_s0 + $0x16] sm:$0x1]   ;;  %s314_s27 = smov 24   ;;  %s316_s4 = smov 12  }
   0xe   :  { %v258_v31 = vld [vmem:[%s433_s0 + $0x1] sm:$0x1]   ;;  %v259_v32 = vld [vmem:[%s433_s0 + $0xa] sm:$0x1]   ;;  %v260_v33 = vld [vmem:[%s433_s0 + $0x15] sm:$0x1]  }
   0xf   :  { %s317_s0 = smov 10   ;;  %vm13_vm4 = vcmask 97280   ;;  %vm16_vm5 = vcmask 1048560   ;;  %vm40_vm6 = vcmask 64512   ;;  %vm26_vm7 = vcmask 80896  }
  0x10   :  { %68 = vrot.lane.b32.xlu0 %v240_v12, %s297_s5  ;;  %74 = vrot.lane.b32.xlu1 %v241_v13, %s298_s6  ;;  %vm29_vm8 = vcmask 1048544   ;;  %vm43_vm9 = vcmask 1048528   ;;  %vm50_vm10 = vcmask 1032064   ;;  %vm56_vm11 = vcmask 1015664  }
  0x11   :  { %vm63_vm12 = vcmask 999264   ;;  %vm70_vm13 = vcmask 917264   ;;  %vm76_vm14 = vcmask 900864   ;;  %vm83_vm15 = vcmask 884464  }
  0x12   :  { %vm90_vm0 = vcmask 802464   ;;  %vm96_vm1 = vcmask 786064   ;;  %vm103_vm2 = vcmask 769664   ;;  %vm110_vm3 = vcmask 687664  }
  0x14   :  { %81 = vrot.lane.b32.xlu0 %v242_v14, %s299_s13  ;;  %88 = vrot.lane.b32.xlu1 %v243_v16, %s300_s14  ;;  %s309_s14 = smov 42  }
  0x18   :  { %94 = vrot.lane.b32.xlu0 %v244_v17, %s301_s19  ;;  %101 = vrot.lane.b32.xlu1 %v245_v18, %s302_s20  ;;  %s311_s20 = smov 38  }
  0x1c   :  { %108 = vrot.lane.b32.xlu0 %v246_v19, %s303_s25  ;;  %114 = vrot.lane.b32.xlu1 %v247_v20, %s304_s26  ;;  %s313_s26 = smov 26  }
  0x20   :  { %121 = vrot.lane.b32.xlu0 %v248_v21, %s305_s2  ;;  %128 = vrot.lane.b32.xlu1 %v249_v22, %s306_s3  ;;  %s315_s3 = smov 14  }
  0x24   :  { %134 = vrot.lane.b32.xlu0 %v250_v23, %s307_s8  ;;  %141 = vrot.lane.b32.xlu1 %v251_v24, %s308_s9 }
  0x28   :  { %148 = vrot.lane.b32.xlu0 %v252_v25, %s309_s14  ;;  %154 = vrot.lane.b32.xlu1 %v253_v26, %s310_s15 }
  0x2c   :  { %161 = vrot.lane.b32.xlu0 %v254_v27, %s311_s20  ;;  %168 = vrot.lane.b32.xlu1 %v255_v28, %s312_s21 }
  0x30   :  { %174 = vrot.lane.b32.xlu0 %v256_v29, %s313_s26  ;;  %181 = vrot.lane.b32.xlu1 %v257_v30, %s314_s27 }
  0x34   :  { %188 = vrot.lane.b32.xlu0 %v258_v31, %s315_s3  ;;  %194 = vrot.lane.b32.xlu1 %v259_v32, %s316_s4 }
  0x38   :  { %201 = vrot.lane.b32.xlu0 %v260_v33, %s317_s0 }
  0x76   :  { %v12_v34 = vpop.permute.xlu0 %11   ;;  %v39_v35 = vpop.permute.xlu1 %38  }
  0x77   :  { %15 = vst.msk [vmem:[#allocation0 + $0x8] sm:$0x1] %vm13_vm4, %v12_v34   ;;  %vm116_vm4 = vcmask 671264  }
  0x78   :  { %17 = vst.msk [vmem:[#allocation0] sm:$0x1] %vm16_vm5, %v12_v34   ;;  %vm123_vm5 = vcmask 654864  }
  0x79   :  { %42 = vst.msk [vmem:[#allocation0 + $0x18] sm:$0x1] %vm40_vm6, %v39_v35   ;;  %vm130_vm6 = vcmask 572864  }
  0x7a   :  { %v25_v36 = vpop.permute.xlu0 %24   ;;  %v49_v37 = vpop.permute.xlu1 %48  }
  0x7b   :  { %28 = vst.msk [vmem:[#allocation0 + $0x10] sm:$0x1] %vm26_vm7, %v25_v36   ;;  %vm136_vm7 = vcmask 556464  }
  0x7c   :  { %31 = vst.msk [vmem:[#allocation0 + $0x8] sm:$0x1] %vm29_vm8, %v25_v36   ;;  %vm143_vm8 = vcmask 540064  }
  0x7d   :  { %45 = vst.msk [vmem:[#allocation0 + $0x10] sm:$0x1] %vm43_vm9, %v39_v35   ;;  %vm150_vm9 = vcmask 458064  }
  0x7e   :  { %51 = vst.msk [vmem:[#allocation0] sm:$0x1] %vm50_vm10, %v49_v37   ;;  %v55_v38 = vpop.permute.xlu0 %54   ;;  %v62_v40 = vpop.permute.xlu1 %61   ;;  %vm156_vm10 = vcmask 441664  }
  0x7f   :  { %58 = vst.msk [vmem:[#allocation0 + $0x8] sm:$0x1] %vm56_vm11, %v55_v38   ;;  %vm163_vm11 = vcmask 425264  }
  0x80   :  { %v224_v39 = vld [vmem:[#allocation0 + $0x18] sm:$0x1]  ;;  %65 = vst.msk [vmem:[#allocation0 + $0x10] sm:$0x1] %vm63_vm12, %v62_v40   ;;  %vm170_vm12 = vcmask 343264  }
  0x81   :  { %263 = vst [vmem:[%s434_s1 + $0x3] sm:$0x1] %v224_v39 }
  0x82   :  { %v69_v41 = vpop.permute.xlu0 %68   ;;  %v75_v42 = vpop.permute.xlu1 %74  }
  0x83   :  { %71 = vst.msk [vmem:[#allocation0] sm:$0x1] %vm70_vm13, %v69_v41   ;;  %vm176_vm13 = vcmask 326864  }
  0x84   :  { %78 = vst.msk [vmem:[#allocation0 + $0x8] sm:$0x1] %vm76_vm14, %v75_v42   ;;  %vm183_vm14 = vcmask 310464  }
  0x86   :  { %v82_v43 = vpop.permute.xlu0 %81   ;;  %v89_v44 = vpop.permute.xlu1 %88  }
  0x87   :  { %85 = vst.msk [vmem:[#allocation0 + $0x10] sm:$0x1] %vm83_vm15, %v82_v43   ;;  %vm190_vm15 = vcmask 228464  }
  0x88   :  { %91 = vst.msk [vmem:[#allocation0] sm:$0x1] %vm90_vm0, %v89_v44   ;;  %vm196_vm0 = vcmask 212064  }
  0x8a   :  { %v95_v45 = vpop.permute.xlu0 %94   ;;  %v102_v46 = vpop.permute.xlu1 %101  }
  0x8b   :  { %98 = vst.msk [vmem:[#allocation0 + $0x8] sm:$0x1] %vm96_vm1, %v95_v45   ;;  %vm203_vm1 = vcmask 195664  }
  0x8c   :  { %105 = vst.msk [vmem:[#allocation0 + $0x10] sm:$0x1] %vm103_vm2, %v102_v46  }
  0x8e   :  { %v109_v47 = vpop.permute.xlu0 %108   ;;  %v115_v48 = vpop.permute.xlu1 %114  }
  0x8f   :  { %111 = vst.msk [vmem:[#allocation0] sm:$0x1] %vm110_vm3, %v109_v47  }
  0x90   :  { %118 = vst.msk [vmem:[#allocation0 + $0x8] sm:$0x1] %vm116_vm4, %v115_v48  }
  0x92   :  { %v122_v49 = vpop.permute.xlu0 %121   ;;  %v129_v50 = vpop.permute.xlu1 %128  }
  0x93   :  { %125 = vst.msk [vmem:[#allocation0 + $0x10] sm:$0x1] %vm123_vm5, %v122_v49  }
  0x94   :  { %131 = vst.msk [vmem:[#allocation0] sm:$0x1] %vm130_vm6, %v129_v50  }
  0x96   :  { %v135_v51 = vpop.permute.xlu0 %134   ;;  %v142_v52 = vpop.permute.xlu1 %141  }
  0x97   :  { %138 = vst.msk [vmem:[#allocation0 + $0x8] sm:$0x1] %vm136_vm7, %v135_v51  }
  0x98   :  { %145 = vst.msk [vmem:[#allocation0 + $0x10] sm:$0x1] %vm143_vm8, %v142_v52  }
  0x9a   :  { %v149_v53 = vpop.permute.xlu0 %148   ;;  %v155_v54 = vpop.permute.xlu1 %154  }
  0x9b   :  { %151 = vst.msk [vmem:[#allocation0] sm:$0x1] %vm150_vm9, %v149_v53  }
  0x9c   :  { %158 = vst.msk [vmem:[#allocation0 + $0x8] sm:$0x1] %vm156_vm10, %v155_v54  }
  0x9e   :  { %v162_v55 = vpop.permute.xlu0 %161   ;;  %v169_v56 = vpop.permute.xlu1 %168  }
  0x9f   :  { %165 = vst.msk [vmem:[#allocation0 + $0x10] sm:$0x1] %vm163_vm11, %v162_v55  }
  0xa0   :  { %171 = vst.msk [vmem:[#allocation0] sm:$0x1] %vm170_vm12, %v169_v56  }
  0xa2   :  { %v175_v57 = vpop.permute.xlu0 %174   ;;  %v182_v58 = vpop.permute.xlu1 %181  }
  0xa3   :  { %178 = vst.msk [vmem:[#allocation0 + $0x8] sm:$0x1] %vm176_vm13, %v175_v57  }
  0xa4   :  { %185 = vst.msk [vmem:[#allocation0 + $0x10] sm:$0x1] %vm183_vm14, %v182_v58  }
  0xa6   :  { %v189_v59 = vpop.permute.xlu0 %188   ;;  %v195_v60 = vpop.permute.xlu1 %194  }
  0xa7   :  { %191 = vst.msk [vmem:[#allocation0] sm:$0x1] %vm190_vm15, %v189_v59  }
  0xa8   :  { %198 = vst.msk [vmem:[#allocation0 + $0x8] sm:$0x1] %vm196_vm0, %v195_v60  }
  0xaa   :  { %v202_v61 = vpop.permute.xlu0 %201  }
  0xab   :  { %205 = vst.msk [vmem:[#allocation0 + $0x10] sm:$0x1] %vm203_vm1, %v202_v61  }
  0xae   :  { %v209_v62 = vld [vmem:[#allocation0] sm:$0x1] }
  0xaf   :  { %211 = vst [vmem:[%s434_s1] sm:$0x1] %v209_v62  ;;  %v213_v63 = vld [vmem:[#allocation0 + $0x8] sm:$0x1] }
  0xb0   :  { %261 = vst [vmem:[%s434_s1 + $0x1] sm:$0x1] %v213_v63 }
  0xb2   :  { %v218_v0 = vld [vmem:[#allocation0 + $0x10] sm:$0x1] }
  0xb3   :  { %262 = vst [vmem:[%s434_s1 + $0x2] sm:$0x1] %v218_v0 }

// kernel: grid_conv_net_forward.1
= control target key start
LH: loop header
LB: loop body
LE: loop exit
PB: predicated region body
PF: predicated region fallthrough
CT: control target
= control target key end

     0   :  { %v1394_v7 = vmov 0.0   ;;  %vm50_vm0 = vcmask 1041408   ;;  %v1395_v13 = vmov 0   ;;  %s1766_s0 = inlined_call_operand.vmem [shape: f32[18,392], index: 0, kind: input, shape index: {}]   ;;  %s1767_s1 = inlined_call_operand.vmem [shape: f32[8,18], index: 1, kind: input, shape index: {}]   ;;  %s1768_s2 = inlined_call_operand.vmem [shape: f32[8,1], index: 2, kind: input, shape index: {}]   ;;  %s1769_s3 = inlined_call_operand.vmem [shape: f32[8,1], index: 3, kind: input, shape index: {}]   ;;  %s1770_s4 = inlined_call_operand.vmem [shape: f32[8,1], index: 4, kind: input, shape index: {}]   ;;  %s1771_s5 = inlined_call_operand.vmem [shape: f32[8,8,196], index: 5, kind: input, shape index: {}]   ;;  %s1772_s6 = inlined_call_operand.vmem [shape: f32[1,8], index: 6, kind: input, shape index: {}]   ;;  %s1773_s7 = inlined_call_operand.hbm [shape: f32[2,8], index: 7, kind: output, shape index: {}]  }
   0x1   :  { %v29_v0 = vld [vmem:[%s1766_s0 + $0x8] sm:$0xff]  ;;  %v31_v2 = vld [vmem:[%s1766_s0 + $0x18] sm:$0xff]  ;;  %v28_v5 = vld [vmem:[%s1766_s0] sm:$0xff]  ;;  %127 = vmatprep.mubr.f32.mxu0 %v1394_v7  ;;  %198 = vmatprep.mubr.f32.mxu1 %v1394_v7 }
   0x2   :  { %v33_v1 = vld [vmem:[%s1766_s0 + $0x28] sm:$0xff]  ;;  %v35_v4 = vld [vmem:[%s1766_s0 + $0x38] sm:$0xff]  ;;  %v32_v6 = vld [vmem:[%s1766_s0 + $0x20] sm:$0xff]  ;;  %1351 = vset.pattern.permute.xlu0 %v1395_v13  ;;  %1352 = vset.pattern.permute.xlu1 %v1395_v13 }
   0x3   :  { %v1338_v3 = vpack.c.bf16 %v33_v1, %v29_v0  ;;  %v1342_v8 = vpack.c.bf16 %v35_v4, %v31_v2  ;;  %v1340_v9 = vpack.c.bf16 %v32_v6, %v28_v5  ;;  %v30_v10 = vld [vmem:[%s1766_s0 + $0x10] sm:$0xff]  ;;  %v37_v12 = vld [vmem:[%s1766_s0 + $0x48] sm:$0x3]  ;;  %v39_v15 = vld [vmem:[%s1766_s0 + $0x58] sm:$0x3] }
   0x4   :  { %v34_v11 = vld [vmem:[%s1766_s0 + $0x30] sm:$0xff]  ;;  %v40_v16 = vld [vmem:[%s1768_s2] sm:$0xff] }
   0x5   :  { %1339 = vmatprep.subr.bf16.mxu0 %v1338_v3  ;;  %v1344_v14 = vpack.c.bf16 %v34_v11, %v30_v10  ;;  %1343 = vmatprep.subr.bf16.mxu1 %v1342_v8 }
   0x6   :  { %1341 = vmatpush1.bf16.msra.mxu0 %v1340_v9 }
   0x7   :  { %12 = vsyncpa [#allocation3], 0  ;;  %1345 = vmatpush1.bf16.msra.mxu1 %v1344_v14  ;;  %1315 = vmatprep.subr.msk.mxu0 %vm50_vm0, %v37_v12  ;;  %v36_v17 = vld [vmem:[%s1766_s0 + $0x40] sm:$0x3]  ;;  %v38_v18 = vld [vmem:[%s1766_s0 + $0x50] sm:$0x3]  ;;  %v263_v58 = vlaneseq }
   0x8   :  { %1318 = vmatprep.subr.msk.mxu1 %vm50_vm0, %v39_v15  ;;  %v27_v19 = vld [vmem:[%s1767_s1] sm:$0xff]  ;;  %vm46_vm1 = vcmask 146432   ;;  %43 = vperm.xlu0 %1351, %v40_v16   ;;  %vm207_vm2 = vcmask 64512   ;;  %v1396_v56 = vmov 1966171168   ;;  %vm667_vm3 = vcmask 556032  }
   0x9   :  { %v227_v49 = vld [vmem:[%s1769_s3] sm:$0xff]  ;;  %v261_v57 = vunpack.c.l.s4 %v1396_v56  ;;  %v264_v0 = vshrl.u32 %v263_v58, 7  ;;  %s1397_s13 = smov 60   ;;  %vm601_vm4 = vcmask 490496   ;;  %vm634_vm5 = vcmask 1040384   ;;  %s1398_s11 = smov [#allocation2]  }
   0xa   :  { %1316 = vmatpush1.msk.msra.mxu0 %vm50_vm0, %v36_v17  ;;  %v231_v52 = vld [vmem:[%s1770_s4] sm:$0xff]  ;;  %vm1276_vm6 = vcmask 58368   ;;  %s1307_s12 = sshll.u32 %s1398_s11, 4  ;;  %s1308_s12 = int_to_ptr.vmem [resolvable:$true] %s1307_s12 }
   0xb   :  { %1319 = vmatpush1.msk.msra.mxu1 %vm50_vm0, %v38_v18  ;;  %1317 = vmatmul.mubr.msk.f32.vlgmr.msra.gmra.mrb[0].mxu0 %vm46_vm1, %v27_v19  ;;  %v262_v63 = vunpack.c.0.s8 %v261_v57  ;;  %v1491_v15 = vsub.s32 0, %v264_v0  ;;  %v1493_v16 = vsub.s32 1, %v264_v0  ;;  %p1375_p1 = scmp.lt.s32.totalorder %s1308_s12, %s1308_s12 }
   0xc   :  { %1320 = vmatmul.mubr.msk.f32.vlgmr.msra.gmra.mrb[0].mxu1 %vm46_vm1, %v27_v19 }
   0xd   :  { %v265_v10 = vsub.s32 %v262_v63, %v264_v0 }
  0x87   :  { %v44_v20 = vpop.permute.xlu0 %43 }
  0xde   :  { %v129_v21 = vpop.f32.mrb[0].mxu0 }
  0xdf   :  { %v130_v22 = vadd.f32 %v129_v21, %v44_v20  ;;  %v200_v23 = vpop.f32.mrb[0].mxu1  ;;  %v131_v24 = vpop.f32.mrb[1].mxu0 }
  0xe0   :  { %v201_v25 = vadd.f32 %v200_v23, %v44_v20  ;;  %v132_v26 = vadd.f32 %v131_v24, %v44_v20  ;;  %v202_v27 = vpop.f32.mrb[1].mxu1 }
  0xe1   :  { %v213_v28 = vmul.f32 %v130_v22, %v130_v22  ;;  %v203_v29 = vadd.f32 %v202_v27, %v44_v20 }
  0xe2   :  { %v205_v30 = vadd.f32 %v132_v26, %v130_v22  ;;  %v214_v31 = vmul.f32 %v132_v26, %v132_v26  ;;  %v215_v34 = vmul.f32 %v201_v25, %v201_v25 }
  0xe3   :  { %v216_v32 = vmul.f32 %v203_v29, %v203_v29  ;;  %v208_v36 = vsel %vm207_vm2, %v203_v29, 0.0 }
  0xe4   :  { %v206_v33 = vadd.f32 %v205_v30, %v201_v25  ;;  %v217_v35 = vadd.f32 %v214_v31, %v213_v28  ;;  %v652_v31 = vld [vmem:[%s1771_s5 + $0x8] sm:$0xff] }
  0xe5   :  { %v219_v39 = vsel %vm207_vm2, %v216_v32, 0.0  ;;  %v651_v32 = vld [vmem:[%s1771_s5] sm:$0xff]  ;;  %1321 = vmatprep.subr.msk.mxu0 %vm667_vm3, %v652_v31 }
  0xe6   :  { %v209_v37 = vadd.f32 %v208_v36, %v206_v33  ;;  %v218_v38 = vadd.f32 %v217_v35, %v215_v34  ;;  %v654_v33 = vld [vmem:[%s1771_s5 + $0x18] sm:$0xff]  ;;  %675 = vmatpush1.xpose.msra.mxu0 %v651_v32 }
  0xe7   :  { %1323 = vmatprep.subr.msk.mxu1 %vm667_vm3, %v654_v33 }
  0xe8   :  { %210 = vadd.xlane.f32.xlu0 %v209_v37  ;;  %v220_v40 = vadd.f32 %v219_v39, %v218_v38 }
  0xea   :  { %221 = vadd.xlane.f32.xlu1 %v220_v40 }
 0x175   :  { %v211_v41 = vpop.xlane.xlu0 %210 }
 0x176   :  { %v212_v42 = vmul.f32 0.0025510204, %v211_v41 }
 0x177   :  { %v222_v43 = vpop.xlane.xlu1 %221 }
 0x178   :  { %v224_v44 = vmul.f32 %v212_v42, %v212_v42  ;;  %v223_v45 = vmul.f32 0.0025510204, %v222_v43 }
 0x17a   :  { %v225_v46 = vsub.f32 %v223_v45, %v224_v44 }
 0x17c   :  { %v226_v47 = vmax.f32 %v225_v46, 0.0  ;;  %v1528_v46 = vsub.s32 2, %v264_v0 }
 0x17e   :  { %v228_v48 = vadd.f32 1e-05, %v226_v47  ;;  %v653_v47 = vld [vmem:[%s1771_s5 + $0x10] sm:$0xff] }
 0x17f   :  { %751 = vmatpush1.xpose.msra.mxu1 %v653_v47 }
 0x180   :  { %1368 = vrsqrt.f32 %v228_v48 }
 0x18a   :  { %v1369_v50 = vpop.eup %1368 }
 0x18b   :  { %v230_v51 = vmul.f32 %v1369_v50, %v227_v49 }
 0x18d   :  { %236 = vperm.xlu1 %1352, %v230_v51   ;;  %v232_v53 = vmul.f32 %v230_v51, %v212_v42 }
 0x18f   :  { %v233_v54 = vsub.f32 %v231_v52, %v232_v53 }
 0x191   :  { %245 = vperm.xlu1 %1352, %v233_v54  }
 0x20c   :  { %v237_v55 = vpop.permute.xlu1 %236 }
 0x20d   :  { %v239_v59 = vmul.f32 %v237_v55, %v130_v22  ;;  %v240_v60 = vmul.f32 %v237_v55, %v132_v26  ;;  %v241_v61 = vmul.f32 %v237_v55, %v201_v25  ;;  %v242_v62 = vmul.f32 %v237_v55, %v203_v29 }
 0x210   :  { %v246_v1 = vpop.permute.xlu1 %245 }
 0x211   :  { %v248_v2 = vadd.f32 %v246_v1, %v239_v59  ;;  %v249_v3 = vadd.f32 %v246_v1, %v240_v60  ;;  %v250_v4 = vadd.f32 %v246_v1, %v241_v61  ;;  %v251_v5 = vadd.f32 %v246_v1, %v242_v62 }
 0x213   :  { %v252_v6 = vmax.f32 %v248_v2, 0.0  ;;  %v253_v7 = vmax.f32 %v249_v3, 0.0  ;;  %v254_v8 = vmax.f32 %v250_v4, 0.0  ;;  %v255_v9 = vmax.f32 %v251_v5, 0.0 }
 0x215   :  { %v258_v11 = vcombine.low %v252_v6, %v253_v7  ;;  %v259_v12 = vcombine.high %v252_v6, %v253_v7  ;;  %v310_v13 = vcombine.low %v253_v7, %v254_v8  ;;  %v311_v14 = vcombine.high %v253_v7, %v254_v8 }
 0x216   :  { %v312_v17 = vcombine.high %v255_v9, %v255_v9  ;;  %v333_v22 = vrot.slane %v255_v9, %v265_v10 }
 0x217   :  { %v266_v18 = vrot.slane %v258_v11, %v265_v10  ;;  %v273_v19 = vrot.slane %v259_v12, %v265_v10  ;;  %v319_v20 = vrot.slane %v310_v13, %v265_v10  ;;  %v326_v21 = vrot.slane %v311_v14, %v265_v10 }
 0x218   :  { %v340_v23 = vrot.slane %v312_v17, %v265_v10 }
 0x219   :  { %v274_v24 = vcombine.high %v266_v18, %v266_v18  ;;  %v1495_v25 = vrot.slane %v266_v18, %v265_v10  ;;  %v1497_v26 = vrot.slane %v273_v19, %v265_v10  ;;  %v341_v27 = vcombine.low %v319_v20, %v333_v22 }
 0x21a   :  { %v342_v28 = vcombine.high %v319_v20, %v333_v22  ;;  %v343_v29 = vcombine.low %v326_v21, %v340_v23  ;;  %v344_v37 = vcombine.high %v326_v21, %v340_v23  ;;  %v275_v53 = vcombine.high %v273_v19, %v273_v19  ;;  %v656_v23 = vld [vmem:[%s1771_s5 + $0x28] sm:$0xff] }
 0x21b   :  { %v384_v30 = vrot.slane %v1495_v25, %v1493_v16  ;;  %v380_v34 = vrot.slane %v1495_v25, %v1491_v15  ;;  %v1512_v35 = vrot.slane %v274_v24, %v265_v10  ;;  %v1516_v36 = vcombine.high %v1495_v25, %v1495_v25  ;;  %v658_v24 = vld [vmem:[%s1771_s5 + $0x38] sm:$0xff]  ;;  %1325 = vmatprep.subr.msk.mxu0 %vm667_vm3, %v656_v23  ;;  %v657_v25 = vld [vmem:[%s1771_s5 + $0x30] sm:$0xff] }
 0x21c   :  { %v365_v38 = vrot.slane %v342_v28, %v265_v10  ;;  %v351_v39 = vrot.slane %v341_v27, %v265_v10  ;;  %v358_v45 = vrot.slane %v343_v29, %v265_v10  ;;  %v372_v48 = vrot.slane %v344_v37, %v265_v10  ;;  %1327 = vmatprep.subr.msk.mxu1 %vm667_vm3, %v658_v24 }
 0x21d   :  { %v392_v40 = vrot.slane %v1512_v35, %v1493_v16  ;;  %v388_v41 = vrot.slane %v1512_v35, %v1491_v15  ;;  %v400_v42 = vrot.slane %v1516_v36, %v1493_v16  ;;  %v396_v57 = vrot.slane %v1516_v36, %v1491_v15 }
 0x21e   :  { %v476_v43 = vrot.slane %v365_v38, %v1493_v16  ;;  %v464_v44 = vrot.slane %v351_v39, %v1493_v16  ;;  %v460_v49 = vrot.slane %v351_v39, %v1491_v15  ;;  %v472_v50 = vrot.slane %v365_v38, %v1491_v15 }
 0x21f   :  { %v516_v51 = vrot.slane %v358_v45, %v1528_v46  ;;  %v468_v52 = vrot.slane %v351_v39, %v1528_v46  ;;  %v524_v54 = vrot.slane %v372_v48, %v1493_v16  ;;  %v375_v56 = vcombine.high %v365_v38, %v365_v38 }
 0x220   :  { %561 = vrot.lane.b32.xlu0 %v476_v43, %s1397_s13  ;;  %555 = vrot.lane.b32.xlu1 %v464_v44, %s1397_s13  ;;  %v1353_v55 = vpack.i.bf16 %v472_v50, %v460_v49  ;;  %v416_v58 = vrot.slane %v1497_v26, %v1493_v16  ;;  %v1548_v59 = vcombine.high %v1512_v35, %v1512_v35 }
 0x221   :  { %v412_v60 = vrot.slane %v1497_v26, %v1491_v15  ;;  %v1552_v61 = vrot.slane %v275_v53, %v265_v10  ;;  %v1556_v62 = vcombine.high %v1497_v26, %v1497_v26  ;;  %v504_v5 = vrot.slane %v375_v56, %v1528_v46 }
 0x222   :  { %v408_v63 = vrot.slane %v1548_v59, %v1493_v16  ;;  %v404_v0 = vrot.slane %v1548_v59, %v1491_v15  ;;  %v480_v6 = vrot.slane %v365_v38, %v1528_v46  ;;  %v374_v7 = vcombine.high %v358_v45, %v358_v45 }
 0x223   :  { %v424_v1 = vrot.slane %v1552_v61, %v1493_v16  ;;  %v432_v2 = vrot.slane %v1556_v62, %v1493_v16  ;;  %v420_v3 = vrot.slane %v1552_v61, %v1491_v15  ;;  %v428_v4 = vrot.slane %v1556_v62, %v1491_v15 }
 0x224   :  { %581 = vrot.lane.b32.xlu0 %v516_v51, %s1397_s13  ;;  %557 = vrot.lane.b32.xlu1 %v468_v52, %s1397_s13  ;;  %v1576_v8 = vcombine.high %v1552_v61, %v1552_v61  ;;  %v536_v11 = vrot.slane %v374_v7, %v1493_v16  ;;  %v512_v12 = vrot.slane %v358_v45, %v1493_v16  ;;  %v655_v52 = vld [vmem:[%s1771_s5 + $0x20] sm:$0xff] }
 0x225   :  { %v508_v13 = vrot.slane %v358_v45, %v1491_v15  ;;  %v520_v14 = vrot.slane %v372_v48, %v1491_v15  ;;  %v532_v17 = vrot.slane %v374_v7, %v1491_v15  ;;  %v376_v19 = vcombine.high %v372_v48, %v372_v48 }
 0x226   :  { %v440_v9 = vrot.slane %v1576_v8, %v1493_v16  ;;  %v436_v10 = vrot.slane %v1576_v8, %v1491_v15  ;;  %v528_v21 = vrot.slane %v372_v48, %v1528_v46  ;;  %v373_v22 = vcombine.high %v351_v39, %v351_v39 }
 0x227   :  { %v1358_v18 = vpack.i.bf16 %v520_v14, %v508_v13  ;;  %v552_v20 = vrot.slane %v376_v19, %v1528_v46  ;;  %v496_v31 = vrot.slane %v375_v56, %v1491_v15  ;;  %v500_v33 = vrot.slane %v375_v56, %v1493_v16 }
 0x228   :  { %585 = vrot.lane.b32.xlu0 %v524_v54, %s1397_s13  ;;  %1354 = vrot.lane.b32.xlu1 %v1353_v55, %s1397_s13  ;;  %v488_v27 = vrot.slane %v373_v22, %v1493_v16  ;;  %v492_v28 = vrot.slane %v373_v22, %v1528_v46  ;;  %v484_v29 = vrot.slane %v373_v22, %v1491_v15  ;;  %v660_v55 = vld [vmem:[%s1771_s5 + $0x48] sm:$0xff] }
 0x229   :  { %v540_v37 = vrot.slane %v374_v7, %v1528_v46  ;;  %v548_v38 = vrot.slane %v376_v19, %v1493_v16  ;;  %v544_v39 = vrot.slane %v376_v19, %v1491_v15 }
 0x22a   :  { %v1363_v32 = vpack.i.bf16 %v496_v31, %v484_v29 }
 0x22c   :  { %575 = vrot.lane.b32.xlu0 %v504_v5, %s1397_s13  ;;  %563 = vrot.lane.b32.xlu1 %v480_v6, %s1397_s13  ;;  %v662_v6 = vld [vmem:[%s1771_s5 + $0x58] sm:$0xff] }
 0x230   :  { %591 = vrot.lane.b32.xlu0 %v536_v11, %s1397_s13  ;;  %579 = vrot.lane.b32.xlu1 %v512_v12, %s1397_s13 }
 0x234   :  { %589 = vrot.lane.b32.xlu0 %v532_v17, %s1397_s13  ;;  %1359 = vrot.lane.b32.xlu1 %v1358_v18, %s1397_s13 }
 0x238   :  { %599 = vrot.lane.b32.xlu0 %v552_v20, %s1397_s13  ;;  %587 = vrot.lane.b32.xlu1 %v528_v21, %s1397_s13 }
 0x23c   :  { %567 = vrot.lane.b32.xlu1 %v488_v27, %s1397_s13 }
 0x240   :  { %569 = vrot.lane.b32.xlu1 %v492_v28, %s1397_s13  ;;  %v659_v28 = vld [vmem:[%s1771_s5 + $0x40] sm:$0xff] }
 0x244   :  { %1364 = vrot.lane.b32.xlu1 %v1363_v32, %s1397_s13  ;;  %v664_v32 = vld [vmem:[%s1771_s5 + $0x68] sm:$0xff] }
 0x248   :  { %573 = vrot.lane.b32.xlu1 %v500_v33, %s1397_s13 }
 0x24c   :  { %593 = vrot.lane.b32.xlu1 %v540_v37, %s1397_s13 }
 0x250   :  { %597 = vrot.lane.b32.xlu1 %v548_v38, %s1397_s13 }
 0x254   :  { %595 = vrot.lane.b32.xlu1 %v544_v39, %s1397_s13  ;;  %s1370_s13 = scalar_lea.vmem %s1308_s12, 32 }
 0x255   :  { %p1371_p0 = scmp.ne.s32.totalorder %s1308_s12, %s1370_s13  ;;  %p1376_p2 = scmp.lt.s32.totalorder %s1370_s13, %s1370_s13 }
 0x257   :  { %p1377_p3 = por %p1376_p2, %p1375_p1 }
 0x259   :  { %p1378_p4 = pnand %p1377_p3, %p1371_p0 }
 0x292   :  { %v556_v43 = vpop.permute.xlu1 %555  ;;  %v562_v50 = vpop.permute.xlu0 %561 }
 0x296   :  { %v558_v44 = vpop.permute.xlu1 %557 }
 0x297   :  { %v603_v45 = vsel %vm601_vm4, %v556_v43, %v558_v44 }
 0x298   :  { %v636_v46 = vsel %vm634_vm5, %v384_v30, %v603_v45  ;;  %v663_v45 = vld [vmem:[%s1771_s5 + $0x60] sm:$0xff] }
 0x299   :  { %1322 = vmatprep.mubr.msk.f32.mxu0 %vm667_vm3, %v636_v46 }
 0x29a   :  { %v1355_v47 = vpop.permute.xlu1 %1354 }
 0x29b   :  { %v1357_v48 = vunpack.i.h.bf16 %v1355_v47  ;;  %v1356_v49 = vunpack.i.l.bf16 %v1355_v47 }
 0x29d   :  { %v602_v51 = vsel %vm601_vm4, %v1356_v49, %v556_v43  ;;  %v604_v30 = vsel %vm601_vm4, %v1357_v48, %v562_v50 }
 0x29e   :  { %v564_v53 = vpop.permute.xlu1 %563  ;;  %v635_v54 = vsel %vm634_vm5, %v380_v34, %v602_v51  ;;  %v637_v34 = vsel %vm634_vm5, %v388_v41, %v604_v30 }
 0x29f   :  { %v605_v56 = vsel %vm601_vm4, %v562_v50, %v564_v53  ;;  %739 = vmatmul.mubr.f32.vlgmr.msra.gmra.mrb[2].mxu0 %v635_v54 }
 0x2a0   :  { %v638_v5 = vsel %vm634_vm5, %v392_v40, %v605_v56  ;;  %827 = vmatpush1.xpose.msra.mxu0 %v655_v52  ;;  %v582_v40 = vpop.permute.xlu0 %581 }
 0x2a1   :  { %1324 = vmatprep.mubr.msk.f32.mxu1 %vm667_vm3, %v638_v5  ;;  %1329 = vmatprep.subr.msk.mxu0 %vm667_vm3, %v660_v55 }
 0x2a2   :  { %v580_v7 = vpop.permute.xlu1 %579  ;;  %815 = vmatmul.mubr.f32.vlgmr.msra.gmra.mrb[2].mxu1 %v637_v34 }
 0x2a3   :  { %903 = vmatpush1.xpose.msra.mxu1 %v657_v25  ;;  %v611_v23 = vsel %vm601_vm4, %v580_v7, %v582_v40 }
 0x2a4   :  { %1331 = vmatprep.subr.msk.mxu1 %vm667_vm3, %v662_v6  ;;  %v586_v12 = vpop.permute.xlu0 %585  ;;  %v644_v38 = vsel %vm634_vm5, %v416_v58, %v611_v23  ;;  %v661_v58 = vld [vmem:[%s1771_s5 + $0x50] sm:$0xff] }
 0x2a6   :  { %v1360_v11 = vpop.permute.xlu1 %1359 }
 0x2a7   :  { %v1361_v21 = vunpack.i.l.bf16 %v1360_v11  ;;  %v1362_v29 = vunpack.i.h.bf16 %v1360_v11 }
 0x2a8   :  { %v576_v17 = vpop.permute.xlu0 %575 }
 0x2a9   :  { %v610_v39 = vsel %vm601_vm4, %v1361_v21, %v580_v7 }
 0x2aa   :  { %v588_v13 = vpop.permute.xlu1 %587  ;;  %v643_v59 = vsel %vm634_vm5, %v412_v60, %v610_v39  ;;  %v665_v60 = vld [vmem:[%s1771_s5 + $0x70] sm:$0xff] }
 0x2ab   :  { %v613_v36 = vsel %vm601_vm4, %v586_v12, %v588_v13 }
 0x2ac   :  { %v592_v19 = vpop.permute.xlu0 %591  ;;  %v646_v49 = vsel %vm634_vm5, %v424_v1, %v613_v36 }
 0x2ae   :  { %v568_v14 = vpop.permute.xlu1 %567 }
 0x2b0   :  { %v590_v43 = vpop.permute.xlu0 %589 }
 0x2b1   :  { %v614_v47 = vsel %vm601_vm4, %v590_v43, %v592_v19 }
 0x2b2   :  { %v570_v35 = vpop.permute.xlu1 %569 }
 0x2b3   :  { %v607_v41 = vsel %vm601_vm4, %v568_v14, %v570_v35 }
 0x2b4   :  { %v640_v18 = vsel %vm634_vm5, %v400_v42, %v607_v41  ;;  %v600_v1 = vpop.permute.xlu0 %599 }
 0x2b5   :  { %1326 = vmatprep.mubr.msk.f32.mxu0 %vm667_vm3, %v640_v18 }
 0x2b6   :  { %v1365_v20 = vpop.permute.xlu1 %1364 }
 0x2b7   :  { %v1366_v22 = vunpack.i.l.bf16 %v1365_v20  ;;  %v1367_v24 = vunpack.i.h.bf16 %v1365_v20 }
 0x2b9   :  { %v606_v27 = vsel %vm601_vm4, %v1366_v22, %v568_v14 }
 0x2ba   :  { %v574_v31 = vpop.permute.xlu1 %573  ;;  %v639_v42 = vsel %vm634_vm5, %v396_v57, %v606_v27 }
 0x2bb   :  { %v608_v33 = vsel %vm601_vm4, %v1367_v24, %v574_v31  ;;  %v609_v37 = vsel %vm601_vm4, %v574_v31, %v576_v17  ;;  %891 = vmatmul.mubr.f32.vlgmr.msra.gmra.mrb[4].mxu0 %v639_v42  ;;  %v1337_v24 = vld [vmem:[%s1772_s6] ss:$0 sm:$0xff] }
 0x2bc   :  { %979 = vmatpush1.xpose.msra.mxu0 %v659_v28  ;;  %1330 = vmatprep.mubr.msk.f32.mxu0 %vm667_vm3, %v644_v38  ;;  %v642_v57 = vsel %vm634_vm5, %v408_v63, %v609_v37  ;;  %v641_v44 = vsel %vm634_vm5, %v404_v0, %v608_v33  ;;  %v612_v63 = vsel %vm601_vm4, %v1362_v29, %v586_v12  ;;  %v666_v0 = vld [vmem:[%s1771_s5 + $0x78] sm:$0xff] }
 0x2bd   :  { %1328 = vmatprep.mubr.msk.f32.mxu1 %vm667_vm3, %v642_v57  ;;  %1333 = vmatprep.subr.msk.mxu0 %vm667_vm3, %v664_v32  ;;  %v645_v50 = vsel %vm634_vm5, %v420_v3, %v612_v63 }
 0x2be   :  { %v594_v46 = vpop.permute.xlu1 %593  ;;  %967 = vmatmul.mubr.f32.vlgmr.msra.gmra.mrb[4].mxu1 %v641_v44 }
 0x2bf   :  { %v615_v48 = vsel %vm601_vm4, %v592_v19, %v594_v46  ;;  %1043 = vmatmul.mubr.f32.vlgmr.msra.gmra.mrb[6].mxu0 %v643_v59  ;;  %1055 = vmatpush1.xpose.msra.mxu1 %v661_v58 }
 0x2c0   :  { %1332 = vmatprep.mubr.msk.f32.mxu1 %vm667_vm3, %v646_v49  ;;  %1131 = vmatpush1.xpose.msra.mxu0 %v663_v45  ;;  %v648_v26 = vsel %vm634_vm5, %v432_v2, %v615_v48  ;;  %v647_v2 = vsel %vm634_vm5, %v428_v4, %v614_v47 }
 0x2c1   :  { %1334 = vmatprep.mubr.msk.f32.mxu0 %vm667_vm3, %v648_v26  ;;  %1335 = vmatprep.subr.msk.mxu1 %vm667_vm3, %v666_v0 }
 0x2c2   :  { %v598_v51 = vpop.permute.xlu1 %597  ;;  %1119 = vmatmul.mubr.f32.vlgmr.msra.gmra.mrb[6].mxu1 %v645_v50 }
 0x2c3   :  { %v617_v52 = vsel %vm601_vm4, %v598_v51, %v600_v1  ;;  %1195 = vmatmul.mubr.f32.vlgmr.msra.gmra.mrb[8].mxu0 %v647_v2  ;;  %1207 = vmatpush1.xpose.msra.mxu1 %v665_v60 }
 0x2c4   :  { %v650_v61 = vsel %vm634_vm5, %v440_v9, %v617_v52 }
 0x2c5   :  { %1336 = vmatprep.mubr.msk.f32.mxu1 %vm667_vm3, %v650_v61 }
 0x2c6   :  { %v596_v3 = vpop.permute.xlu1 %595 }
 0x2c7   :  { %v616_v53 = vsel %vm601_vm4, %v596_v3, %v598_v51 }
 0x2c8   :  { %v649_v62 = vsel %vm634_vm5, %v436_v10, %v616_v53 }
 0x2c9   :  { %1271 = vmatmul.mubr.f32.vlgmr.msra.gmra.mrb[8].mxu1 %v649_v62 }
 0x372   :  { %v740_v4 = vpop.f32.mrb[2].mxu0 }
 0x373   :  { %v742_v54 = vpop.f32.mrb[3].mxu0  ;;  %v1277_v55 = vsel %vm1276_vm6, %v740_v4, 0.0 }
 0x375   :  { %v816_v30 = vpop.f32.mrb[2].mxu1 }
 0x376   :  { %v1278_v16 = vsel %vm1276_vm6, %v816_v30, 0.0  ;;  %v818_v9 = vpop.f32.mrb[3].mxu1 }
 0x377   :  { %v1279_v56 = vadd.f32 %v1278_v16, %v1277_v55 }
 0x38e   :  { %v892_v5 = vpop.f32.mrb[4].mxu0 }
 0x38f   :  { %v1280_v25 = vsel %vm1276_vm6, %v892_v5, 0.0  ;;  %v894_v34 = vpop.f32.mrb[5].mxu0 }
 0x390   :  { %v1281_v6 = vadd.f32 %v1280_v25, %v1279_v56 }
 0x391   :  { %v968_v7 = vpop.f32.mrb[4].mxu1 }
 0x392   :  { %v1282_v15 = vsel %vm1276_vm6, %v968_v7, 0.0  ;;  %v970_v8 = vpop.f32.mrb[5].mxu1  ;;  %v1044_v10 = vpop.f32.mrb[6].mxu0 }
 0x393   :  { %v1283_v40 = vadd.f32 %v1282_v15, %v1281_v6  ;;  %v1284_v11 = vsel %vm1276_vm6, %v1044_v10, 0.0  ;;  %v1046_v12 = vpop.f32.mrb[7].mxu0 }
 0x395   :  { %v1285_v13 = vadd.f32 %v1284_v11, %v1283_v40  ;;  %v1120_v14 = vpop.f32.mrb[6].mxu1 }
 0x396   :  { %v1286_v17 = vsel %vm1276_vm6, %v1120_v14, 0.0  ;;  %v1122_v35 = vpop.f32.mrb[7].mxu1  ;;  %v1196_v41 = vpop.f32.mrb[8].mxu0 }
 0x397   :  { %v1287_v18 = vadd.f32 %v1286_v17, %v1285_v13  ;;  %v1288_v19 = vsel %vm1276_vm6, %v1196_v41, 0.0  ;;  %v1198_v20 = vpop.f32.mrb[9].mxu0 }
 0x399   :  { %v1289_v21 = vadd.f32 %v1288_v19, %v1287_v18 }
 0x39c   :  { %v1272_v22 = vpop.f32.mrb[8].mxu1 }
 0x39d   :  { %v1290_v23 = vsel %vm1276_vm6, %v1272_v22, 0.0  ;;  %v1274_v27 = vpop.f32.mrb[9].mxu1 }
 0x39e   :  { %v1291_v28 = vadd.f32 %v1290_v23, %v1289_v21 }
 0x3a0   :  { %v1299_v29 = vadd.f32 %v1337_v24, %v1291_v28 }
 0x3a2   :  { %1300 = vst.msk [vmem:[#allocation2] sm:$0x3] %vm1276_vm6, %v1299_v29 }
 0x3a3   :  { %1381 = shalt.err (!%p1378_p4)
}
 0x3a4   :  { %s1382_s16 = scalar_lea.hbm %s1773_s7, 32 }
 0x3a5   :  { %p1383_p5 = scmp.ne.s32.totalorder %s1773_s7, %s1382_s16  ;;  %p1386_p6 = scmp.lt.u32.totalorder %s1382_s16, %s1773_s7 }
 0x3a7   :  { %p1388_p7 = pnand %p1386_p6, %p1383_p5 }
 0x3a9   :  { %1391 = shalt.err (!%p1388_p7)
}
 0x3aa   :  { %1310 = dma.vmem_to_hbm [thread:$0]  %s1308_s12, 32, %s1773_s7, [#allocation3]  }
 0x3ab   :  { %1392 = dma.done.wait [#allocation3], 32  }
 0x3ac   :  { %1393 = vsyncadd [#allocation3], 4294967264 }
 0x3ad   :  { %1314 = vsyncpa [#allocation3], 1 }

</bundles_post_ra>
